<compile_context>
chip_gen: v7x
topology: tpu7x:2x2x1
jax: 0.10.0
libtpu: 0.0.40
codegen_flags: <defaults>
</compile_context>

<pallas_src>
import functools
import math

import jax
import jax.numpy as jnp
from jax.experimental import pallas as pl
from jax.experimental.pallas import tpu as pltpu


def make_positional_encoding_table(d_model: int, max_len: int = 5000,
                                   dtype=jnp.float32) -> jnp.ndarray:
    """Deterministic PE table, shape (max_len, d_model) (PyTorch buffer pe[:, 0, :])."""
    position = jnp.arange(max_len, dtype=jnp.float32)[:, None]          # (L, 1)
    div_term = jnp.exp(jnp.arange(0, d_model, 2, dtype=jnp.float32)
                       * (-math.log(10000.0) / d_model))                # (ceil(D/2),)
    angles = position * div_term                                        # (L, ceil(D/2))
    pe = jnp.zeros((max_len, d_model), dtype=jnp.float32)
    pe = pe.at[:, 0::2].set(jnp.sin(angles))
    pe = pe.at[:, 1::2].set(jnp.cos(angles)[:, : d_model // 2])         # odd d_model safe
    return pe.astype(dtype)


def _pe_add_kernel(x_ref, pe_ref, o_ref, *, batch: int):
    # x_ref / o_ref : (ts, batch*d_model)   lane-dense folded view of x
    # pe_ref        : (ts, d_model)
    # Build the broadcast PE tile once, then one full-lane-width add + store.
    pe_row = pe_ref[...]
    pe_b = jnp.tile(pe_row, (1, batch)) if batch > 1 else pe_row
    o_ref[...] = (x_ref[...] + pe_b).astype(o_ref.dtype)


def _round_up(n: int, m: int) -> int:
    return ((n + m - 1) // m) * m


def _round_down(n: int, m: int) -> int:
    return (n // m) * m


def _vmem_capacity_bytes() -> int:
    """Physical VMEM per TensorCore; conservative 64 MiB fallback (v7x)."""
    try:
        cap = getattr(pltpu.get_tpu_info(), "vmem_capacity_bytes", None)
        if cap:
            return int(cap)
    except Exception:
        pass
    return 64 << 20


def _choose_seq_tile(seq_len: int, row_bytes: int, pe_row_bytes: int, align: int,
                     target_bytes: int, budget_bytes: int,
                     *, min_tile_bytes: int = 1 << 20, min_steps: int = 8) -> int:
    """Pick seq-tile rows: multiple of `align`, x tile <= target, pipelined
    buffers (2x in + 2x out + 2x pe + slack) <= budget; prefer >= min_steps
    grid steps (>= 4 per TC on v7x) while the x tile stays >= min_tile_bytes."""
    seq_full = _round_up(max(seq_len, 1), align)
    slack = 4 << 20
    cap_rows = max((budget_bytes - slack) // (4 * row_bytes + 2 * pe_row_bytes), 1)
    tgt_rows = max(target_bytes // row_bytes, 1)
    ts = _round_down(min(cap_rows, tgt_rows), align)
    ts = max(ts, align)
    ts = min(ts, seq_full)
    # Prefer enough grid steps for software pipelining / megacore balance.
    while -(-seq_full // ts) < min_steps:
        half = _round_down(ts // 2, align)
        if half < align or half * row_bytes < min_tile_bytes:
            break
        ts = half
    return ts


def positional_encoding_forward(x: jnp.ndarray, pe: jnp.ndarray,
                                *, target_tile_bytes: int | None = None) -> jnp.ndarray:
    """x: (S, B, D); pe: (max_len, D).  Returns x + pe[:S] (dropout = eval mode)."""
    S, B, D = x.shape
    assert pe.ndim == 2 and pe.shape[1] == D and pe.shape[0] >= S

    if pe.dtype != x.dtype:
        pe = pe.astype(x.dtype)                 # keep the in-kernel add single-dtype

    itemsize = jnp.dtype(x.dtype).itemsize
    align = 8 * max(1, 4 // itemsize)           # sublane packing: 8 f32 / 16 bf16 / 32 int8
    BD = B * D
    row_bytes = BD * itemsize
    pe_row_bytes = D * itemsize

    vmem_cap = _vmem_capacity_bytes()
    # Keep all pipelined buffers comfortably under physical VMEM (64 MiB on v7x).
    vmem_budget = min(int(vmem_cap * 0.75), 96 << 20)
    if target_tile_bytes is None:
        target_tile_bytes = (16 << 20) if vmem_cap >= (96 << 20) else (8 << 20)

    ts = _choose_seq_tile(S, row_bytes, pe_row_bytes, align,
                          target_tile_bytes, vmem_budget)
    n_steps = -(-S // ts)                       # cdiv
    S_pad = n_steps * ts

    x2 = x.reshape(S, BD)                       # free for default row-major layout
    if S_pad != S:
        x2 = jnp.pad(x2, ((0, S_pad - S), (0, 0)))

    # Pass the full pe table (BlockSpec selects rows; no HBM slice copy) unless
    # the padded grid would read past it, in which case slice+pad once (tiny).
    pe_arg = pe if S_pad <= pe.shape[0] else jnp.pad(pe[:S], ((0, S_pad - S), (0, 0)))

    tile_x_bytes = ts * row_bytes
    tile_pe_bytes = ts * pe_row_bytes
    # double-buffered x-in + out tiles + pe tile + slack, capped at physical VMEM
    vmem_limit = 2 * (2 * tile_x_bytes) + 2 * tile_pe_bytes + (4 << 20)
    vmem_limit = min(max(vmem_limit, 32 << 20), vmem_cap)

    cost = pl.CostEstimate(
        flops=S * B * D,
        transcendentals=0,
        bytes_accessed=(2 * S * B * D + S * D) * itemsize)

    kernel = functools.partial(_pe_add_kernel, batch=B)
    out2 = pl.pallas_call(
        kernel,
        out_shape=jax.ShapeDtypeStruct((S_pad, BD), x.dtype),
        grid_spec=pltpu.PrefetchScalarGridSpec(
            num_scalar_prefetch=0,
            grid=(n_steps,),
            in_specs=[
                pl.BlockSpec((ts, BD), lambda i: (i, 0)),
                pl.BlockSpec((ts, D), lambda i: (i, 0)),
            ],
            out_specs=pl.BlockSpec((ts, BD), lambda i: (i, 0)),
        ),
        compiler_params=pltpu.CompilerParams(
            dimension_semantics=("parallel",),
            vmem_limit_bytes=int(vmem_limit)),
        cost_estimate=cost,
        # Elementwise, in-place safe: output aliases the folded x slab.  Donate
        # x at the jit boundary to make this zero-copy.
        input_output_aliases={0: 0},
    )(x2, pe_arg)

    if S_pad != S:
        out2 = out2[:S]
    return out2.reshape(S, B, D)


if __name__ == "__main__":
    d_model = 32
    max_len = 5000
    seq_len = 8
    batch = 2

    key = jax.random.PRNGKey(0)
    x = jax.random.normal(key, (seq_len, batch, d_model), dtype=jnp.float32)
    pe = make_positional_encoding_table(d_model, max_len)

    # Pure-JAX reference, computed before the kernel call (independent of aliasing).
    y_ref = x + pe[:seq_len][:, None, :]

    fwd = jax.jit(positional_encoding_forward)
    y = jax.block_until_ready(fwd(x, pe))

    assert y.shape == (seq_len, batch, d_model)
    assert jnp.allclose(y, y_ref, atol=1e-6), "mismatch vs reference"

    print("KERNEL_OK")
</pallas_src>

<mosaic_0001>
module attributes {stable_mosaic.version = 11 : i64} {
  func.func @_pe_add_kernel(%arg0: i32, %arg1: memref<8x64xf32, #tpu.memory_space<vmem>>, %arg2: memref<8x32xf32, #tpu.memory_space<vmem>>, %arg3: memref<8x64xf32, #tpu.memory_space<vmem>>) attributes {dimension_semantics = [#tpu.dimension_semantics<parallel>], iteration_bounds = array<i64: 1>, scalar_prefetch = 0 : i64, scratch_operands = 0 : i64, tpu.core_type = #tpu.core_type<tc>, window_params = [{transform_indices = @transform_0, window_bounds = array<i64: 8, 64>}, {transform_indices = @transform_1, window_bounds = array<i64: 8, 32>}, {transform_indices = @transform_2, window_bounds = array<i64: 8, 64>}]} {
    %c0 = arith.constant 0 : index
    %c0_0 = arith.constant 0 : index
    %0 = vector.load %arg2[%c0, %c0_0] : memref<8x32xf32, #tpu.memory_space<vmem>>, vector<8x32xf32>
    %1 = tpu.concatenate %0, %0 in 1 : vector<8x32xf32>, vector<8x32xf32> -> vector<8x64xf32>
    %c0_1 = arith.constant 0 : index
    %c0_2 = arith.constant 0 : index
    %2 = vector.load %arg1[%c0_1, %c0_2] : memref<8x64xf32, #tpu.memory_space<vmem>>, vector<8x64xf32>
    %3 = arith.addf %2, %1 : vector<8x64xf32>
    %c0_3 = arith.constant 0 : index
    %c0_4 = arith.constant 0 : index
    %4 = vector.load %arg3[%c0_3, %c0_4] : memref<8x64xf32, #tpu.memory_space<vmem>>, vector<8x64xf32>
    tpu.vector_store %arg3[%c0_3, %c0_4], %3 {strides = array<i32>} : memref<8x64xf32, #tpu.memory_space<vmem>>, vector<8x64xf32>,
    return
  }
  func.func @transform_0(%arg0: i32) -> (i32, i32) {
    %c0_i32 = arith.constant 0 : i32
    %c0_i32_0 = arith.constant 0 : i32
    return %arg0, %c0_i32 : i32, i32
  }
  func.func @transform_1(%arg0: i32) -> (i32, i32) {
    %c0_i32 = arith.constant 0 : i32
    %c0_i32_0 = arith.constant 0 : i32
    return %arg0, %c0_i32 : i32, i32
  }
  func.func @transform_2(%arg0: i32) -> (i32, i32) {
    %c0_i32 = arith.constant 0 : i32
    %c0_i32_0 = arith.constant 0 : i32
    return %arg0, %c0_i32 : i32, i32
  }
}

</mosaic_0001>

<bundles_post_ra>
// kernel: positional_encoding_forward.1
= control target key start
LH: loop header
LB: loop body
LE: loop exit
PB: predicated region body
PF: predicated region fallthrough
CT: control target
= control target key end

     0   :  { %s27_s11 = smov 32   ;;  %vm16_vm0 = vcmask 261120   ;;  %vm20_vm1 = vcmask 523264   ;;  %s52_s1 = inlined_call_operand.vmem [shape: f32[5000,32], index: 1, kind: input, shape index: {}]   ;;  %s53_s0 = inlined_call_operand.vmem [shape: f32[8,64], index: 0, kind: input, shape index: {}, may-alias: {0,2}]   ;;  %s54_s2 = inlined_call_operand.vmem [shape: f32[8,64], index: 2, kind: output, shape index: {}, may-alias: {0,2}]  }
   0x1   :  { %v11_v0 = vld [vmem:[%s52_s1] sm:$0xff] }
   0x2   :  { %13 = vrot.lane.b32.xlu0 %v11_v0, %s27_s11  ;;  %v18_v1 = vld [vmem:[%s53_s0] sm:$0xff] }
  0x74   :  { %v14_v2 = vpop.permute.xlu0 %13 }
  0x75   :  { %v17_v3 = vsel %vm16_vm0, %v11_v0, %v14_v2 }
  0x76   :  { %v19_v4 = vadd.f32 %v18_v1, %v17_v3 }
  0x78   :  { %21 = vst.msk [vmem:[%s54_s2] sm:$0xff] %vm20_vm1, %v19_v4 }

</bundles_post_ra>
